<compile_context>
chip_gen: v7x
topology: tpu7x:2x2x1
jax: 0.10.0
libtpu: 0.0.40
codegen_flags: <defaults>
</compile_context>

<pallas_src>
import functools

import jax
import jax.numpy as jnp
from jax import lax
from jax.experimental import pallas as pl
from jax.experimental.pallas import tpu as pltpu


def _round_up(x, m):
    return (x + m - 1) // m * m


# ----------------------------------------------------------------------------
# Pallas kernel: chunked LSTM h-recurrence with lane-packed h writeback.
# ----------------------------------------------------------------------------
def lstm_recurrence_kernel(gates_ref, whh_ref, hout_ref, h_sc, c_sc, stage_sc,
                           *, lane_pack):
    """Runs TS LSTM steps for one (batch block, time chunk) grid cell.

    gates_ref : [TS, BB, 4H]      x_t @ W_ih + b (i/f/o columns pre-halved)
    whh_ref   : [H, 4H]           recurrent weights (i/f/o columns pre-halved)
    hout_ref  : [TS//k, BB, k*H]  h_t, k timesteps packed along lanes
    h_sc,c_sc : [BB, H]           recurrent state carried across time chunks
    stage_sc  : [BB, k*H]         lane-dense staging tile for the h writeback
    """
    TS = gates_ref.shape[0]
    BB, H = h_sc.shape
    k = lane_pack

    # (h, c) start at zero for every batch block: re-init whenever the time
    # axis (grid axis 1) restarts.
    @pl.when(pl.program_id(1) == 0)
    def _():
        h_sc[...] = jnp.zeros_like(h_sc)
        c_sc[...] = jnp.zeros_like(c_sc)

    # Lane mask selecting the 'g' (cell candidate) gate block.  Gate order
    # along 4H is (i, f, g, o).  Hoisted out of the time loop.
    col = lax.broadcasted_iota(jnp.int32, (BB, 4 * H), 1)
    is_g = jnp.logical_and(col >= 2 * H, col < 3 * H)

    whh = whh_ref[...]            # resident for the whole chunk
    n_groups = TS // k

    def group_step(grp, carry):
        h, c = carry
        # Static inner loop over the k packed sub-steps -> static lane offsets.
        for s in range(k):
            gates = gates_ref[grp * k + s] + jnp.dot(
                h, whh, preferred_element_type=jnp.float32)
            # i/f/o columns were pre-scaled by 0.5 in the wrapper, so a single
            # EUP tanh pass over the whole [BB, 4H] tile gives
            #   sigmoid(x) = 0.5 * (1 + tanh(x/2))   for i, f, o
            #   tanh(x)                               for g
            t = jnp.tanh(gates)
            act = jnp.where(is_g, t, 0.5 * (t + 1.0))
            i = act[:, 0 * H:1 * H]
            f = act[:, 1 * H:2 * H]
            g = act[:, 2 * H:3 * H]
            o = act[:, 3 * H:4 * H]
            c = f * c + i * g
            h = o * jnp.tanh(c)
            stage_sc[:, s * H:(s + 1) * H] = h
        # One lane-dense [BB, k*H] store per k timesteps.
        hout_ref[grp] = stage_sc[...]
        return h, c

    h_fin, c_fin = lax.fori_loop(
        0, n_groups, group_step, (h_sc[...], c_sc[...]),
        unroll=min(n_groups, max(1, 8 // k)))
    h_sc[...] = h_fin
    c_sc[...] = c_fin


# ----------------------------------------------------------------------------
# Wrapper: hoisted matmuls (XLA) + Pallas recurrence + hoisted projection.
# ----------------------------------------------------------------------------
def generator_forward(params, img_feature, target_sent, target_sent_len,
                      *, time_chunk=64, batch_block=128):
    B, IH = img_feature.shape
    seq_len = target_sent.shape[1]
    T = seq_len - 1
    H = params["w_hh"].shape[0]
    V = params["w_out"].shape[1]

    # Lane-packing factor for the h writeback.
    if H < 128 and 128 % H == 0:
        k = 128 // H
    else:
        k = 1   # TODO(synk): H not a divisor/multiple of 128 -> masked stores

    # Batch padding / blocking (batch blocks form the "parallel" grid axis).
    Bp = _round_up(B, 8)
    BB = min(batch_block, Bp)
    Bp = _round_up(Bp, BB)

    # Time chunk sizing: large chunks amortize the per-grid-step overhead.
    # Per-chunk VMEM ~ 2*TS*BB*4H*4 (gates, dbl-buffered) + 2*(TS/k)*BB*kH*4
    # (hout) + H*4H*4 (w_hh): trivially small here; re-derive TS for v7x
    # (64 MiB VMEM) at production Bp/H.
    Ttot = T + 1                      # +1 for the image priming step
    TS = max(k, min(time_chunk, _round_up(Ttot, k)))
    TS = _round_up(TS, k)
    Tp = _round_up(Ttot, TS)

    # --- Fold sigmoid(x) = 0.5*(1 + tanh(x/2)) pre-scale into the weights:
    #     halve the i/f/o gate columns once (tiny one-time op, removes a
    #     select+mul from the per-step critical path inside the kernel). -----
    gate_scale = jnp.concatenate([
        jnp.full((2 * H,), 0.5, jnp.float32),   # i, f
        jnp.ones((H,), jnp.float32),            # g
        jnp.full((H,), 0.5, jnp.float32)])      # o
    w_ih = params["w_ih"] * gate_scale
    w_hh = params["w_hh"] * gate_scale
    b_lstm = params["b_lstm"] * gate_scale

    # --- Hoisted, time-independent matmuls (single large 2-D GEMMs) --------
    img_p = jnp.zeros((Bp, IH), jnp.float32).at[:B].set(img_feature)
    img_embed = jnp.maximum(img_p @ params["w_img"] + params["b_img"], 0.0)
    gates_img = img_embed @ w_ih + b_lstm                            # [Bp, 4H]

    # Token embeddings gathered directly into the padded time-major layout so
    # the GEMM writes [Tp-1, Bp, 4H] with no later pad/copy pass.
    tokens_tm = jnp.zeros((Tp - 1, Bp), target_sent.dtype)
    tokens_tm = tokens_tm.at[:T, :B].set(
        jnp.transpose(target_sent[:, :-1], (1, 0)))
    x_flat = jnp.take(params["emb"], tokens_tm.reshape(-1), axis=0)  # [(Tp-1)*Bp, E]
    gates_x = (x_flat @ w_ih + b_lstm).reshape(Tp - 1, Bp, 4 * H)    # one 2-D GEMM

    # Step 0 is the image "priming" LSTM step (zero initial state); its input
    # preactivation slots in as the first timestep of the gate sequence.
    gates_seq = jnp.concatenate([gates_img[None], gates_x], axis=0)  # [Tp, Bp, 4H]

    # --- Serial h-recurrence in Pallas --------------------------------------
    h_packed = pl.pallas_call(
        functools.partial(lstm_recurrence_kernel, lane_pack=k),
        out_shape=jax.ShapeDtypeStruct((Tp // k, Bp, k * H), jnp.float32),
        grid_spec=pltpu.PrefetchScalarGridSpec(
            num_scalar_prefetch=0,
            grid=(Bp // BB, Tp // TS),          # (batch blocks, time chunks)
            in_specs=[
                pl.BlockSpec((TS, BB, 4 * H), lambda b, t: (t, b, 0)),
                pl.BlockSpec((H, 4 * H), lambda b, t: (0, 0)),  # w_hh resident
            ],
            out_specs=pl.BlockSpec((TS // k, BB, k * H), lambda b, t: (t, b, 0)),
            scratch_shapes=[
                pltpu.VMEM((BB, H), jnp.float32),        # h carry
                pltpu.VMEM((BB, H), jnp.float32),        # c carry
                pltpu.VMEM((BB, k * H), jnp.float32),    # lane-dense staging
            ],
        ),
        compiler_params=pltpu.CompilerParams(
            dimension_semantics=("parallel", "arbitrary")),
    )(gates_seq, w_hh)

    # --- Hoisted output projection: one batch-major 2-D GEMM ----------------
    # Only the SMALL h tensor is unpacked/transposed; the large [B, T, V]
    # logits are written batch-major directly by the GEMM (no big transpose).
    h_all = h_packed.reshape(Tp // k, Bp, k, H)
    h_all = jnp.transpose(h_all, (1, 0, 2, 3)).reshape(Bp, Tp, H)
    h_tok = h_all[:B, 1:Ttot]                                        # [B, T, H]
    pred_words_probs = (h_tok.reshape(B * T, H) @ params["w_out"]
                        + params["b_out"]).reshape(B, T, V)

    sampled_sent = target_sent
    sampled_sent_len = target_sent_len.reshape(-1)
    return pred_words_probs, sampled_sent, sampled_sent_len


# ----------------------------------------------------------------------------
# Pure-JAX reference (standard sigmoid/tanh formulation, unscaled weights).
# ----------------------------------------------------------------------------
def _lstm_step_ref(x, h, c, w_ih, w_hh, b):
    H = h.shape[-1]
    gates = x @ w_ih + h @ w_hh + b
    i = jax.nn.sigmoid(gates[:, 0 * H:1 * H])
    f = jax.nn.sigmoid(gates[:, 1 * H:2 * H])
    g = jnp.tanh(gates[:, 2 * H:3 * H])
    o = jax.nn.sigmoid(gates[:, 3 * H:4 * H])
    c_new = f * c + i * g
    h_new = o * jnp.tanh(c_new)
    return h_new, c_new


def reference_forward(params, img_feature, target_sent):
    B = img_feature.shape[0]
    H = params["w_hh"].shape[0]
    img_embed = jnp.maximum(
        img_feature @ params["w_img"] + params["b_img"], 0.0)
    h = jnp.zeros((B, H), jnp.float32)
    c = jnp.zeros((B, H), jnp.float32)
    h, c = _lstm_step_ref(img_embed, h, c,
                          params["w_ih"], params["w_hh"], params["b_lstm"])
    preds = []
    for t in range(target_sent.shape[1] - 1):
        x_t = params["emb"][target_sent[:, t]]
        h, c = _lstm_step_ref(x_t, h, c,
                              params["w_ih"], params["w_hh"], params["b_lstm"])
        preds.append(h @ params["w_out"] + params["b_out"])
    return jnp.stack(preds, axis=1)


def init_params(key, vocab, embed, hidden, img_hidden, pad_idx):
    ks = jax.random.split(key, 9)
    scale = 0.1
    emb = jax.random.normal(ks[0], (vocab, embed), jnp.float32) * scale
    emb = emb.at[pad_idx].set(0.0)   # padding_idx row zeroed, as nn.Embedding
    return {
        "emb": emb,
        "w_img": jax.random.normal(ks[1], (img_hidden, embed), jnp.float32) * scale,
        "b_img": jax.random.normal(ks[2], (1, embed), jnp.float32) * scale,
        "w_ih": jax.random.normal(ks[3], (embed, 4 * hidden), jnp.float32) * scale,
        "w_hh": jax.random.normal(ks[4], (hidden, 4 * hidden), jnp.float32) * scale,
        # b_ih + b_hh folded into one bias vector.
        "b_lstm": jax.random.normal(ks[5], (1, 4 * hidden), jnp.float32) * scale,
        "w_out": jax.random.normal(ks[6], (hidden, vocab), jnp.float32) * scale,
        "b_out": jax.random.normal(ks[7], (1, vocab), jnp.float32) * scale,
    }


if __name__ == "__main__":
    key = jax.random.PRNGKey(0)

    # Small config consistent with the module's __init__.
    batch = 2
    seq_len = 8
    vocab_size = 64
    embed_size = 32
    g_hidden_size = 32
    image_hidden = 48
    pad_idx, start_idx, end_idx = 0, 1, 2

    kp, ki, kt = jax.random.split(key, 3)
    params = init_params(kp, vocab_size, embed_size, g_hidden_size,
                         image_hidden, pad_idx)

    img_feature = jax.random.normal(ki, (batch, image_hidden), jnp.float32)
    target_sent = jax.random.randint(kt, (batch, seq_len), 3, vocab_size,
                                     dtype=jnp.int32)
    target_sent = target_sent.at[:, 0].set(start_idx).at[:, -1].set(end_idx)
    target_sent_len = jnp.full((batch,), seq_len, jnp.int32)

    fwd = jax.jit(functools.partial(generator_forward, params))
    pred, sampled, slen = fwd(img_feature, target_sent, target_sent_len)
    jax.block_until_ready((pred, sampled, slen))

    ref = reference_forward(params, img_feature, target_sent)
    assert pred.shape == (batch, seq_len - 1, vocab_size)
    assert sampled.shape == (batch, seq_len)
    assert slen.shape == (batch,)
    assert jnp.allclose(pred, ref, atol=1e-4, rtol=1e-4), "mismatch vs reference"

    print("KERNEL_OK")
</pallas_src>

<mosaic_0001>
module attributes {stable_mosaic.version = 11 : i64} {
  func.func @lstm_recurrence_kernel(%arg0: i32, %arg1: i32, %arg2: memref<8x8x128xf32, #tpu.memory_space<vmem>>, %arg3: memref<32x128xf32, #tpu.memory_space<vmem>>, %arg4: memref<2x8x128xf32, #tpu.memory_space<vmem>>, %arg5: memref<8x32xf32, #tpu.memory_space<vmem>>, %arg6: memref<8x32xf32, #tpu.memory_space<vmem>>, %arg7: memref<8x128xf32, #tpu.memory_space<vmem>>) attributes {dimension_semantics = [#tpu.dimension_semantics<parallel>, #tpu.dimension_semantics<arbitrary>], iteration_bounds = array<i64: 1, 1>, scalar_prefetch = 0 : i64, scratch_operands = 3 : i64, tpu.core_type = #tpu.core_type<tc>, window_params = [{transform_indices = @transform_0, window_bounds = array<i64: 8, 8, 128>}, {pipeline_mode = #tpu.pipeline_mode<synchronous>, transform_indices = @transform_1, window_bounds = array<i64: 32, 128>}, {transform_indices = @transform_2, window_bounds = array<i64: 2, 8, 128>}]} {
    %c0_i32 = arith.constant 0 : i32
    %0 = arith.cmpi eq, %arg1, %c0_i32 : i32
    %1 = arith.extui %0 : i1 to i32
    %c0_i32_0 = arith.constant 0 : i32
    %2 = arith.cmpi ne, %1, %c0_i32_0 : i32
    scf.if %2 {
      %cst_85 = arith.constant 0.000000e+00 : f32
      %208 = vector.broadcast %cst_85 : f32 to vector<8x32xf32>
      %c0_86 = arith.constant 0 : index
      %c0_87 = arith.constant 0 : index
      %209 = vector.load %arg5[%c0_86, %c0_87] : memref<8x32xf32, #tpu.memory_space<vmem>>, vector<8x32xf32>
      tpu.vector_store %arg5[%c0_86, %c0_87], %208 {strides = array<i32>} : memref<8x32xf32, #tpu.memory_space<vmem>>, vector<8x32xf32>,
      %cst_88 = arith.constant 0.000000e+00 : f32
      %210 = vector.broadcast %cst_88 : f32 to vector<8x32xf32>
      %c0_89 = arith.constant 0 : index
      %c0_90 = arith.constant 0 : index
      %211 = vector.load %arg6[%c0_89, %c0_90] : memref<8x32xf32, #tpu.memory_space<vmem>>, vector<8x32xf32>
      tpu.vector_store %arg6[%c0_89, %c0_90], %210 {strides = array<i32>} : memref<8x32xf32, #tpu.memory_space<vmem>>, vector<8x32xf32>,
    } else {
    }
    %3 = tpu.iota {dimensions = array<i32: 1>} : vector<8x128xi32>
    %c64_i32 = arith.constant 64 : i32
    %4 = vector.broadcast %c64_i32 : i32 to vector<8x128xi32>
    %5 = arith.cmpi sge, %3, %4 : vector<8x128xi32>
    %c96_i32 = arith.constant 96 : i32
    %6 = vector.broadcast %c96_i32 : i32 to vector<8x128xi32>
    %7 = arith.cmpi slt, %3, %6 : vector<8x128xi32>
    %8 = arith.andi %5, %7 : vector<8x128xi1>
    %c0 = arith.constant 0 : index
    %c0_1 = arith.constant 0 : index
    %9 = vector.load %arg3[%c0, %c0_1] : memref<32x128xf32, #tpu.memory_space<vmem>>, vector<32x128xf32>
    %c0_2 = arith.constant 0 : index
    %c0_3 = arith.constant 0 : index
    %10 = vector.load %arg5[%c0_2, %c0_3] : memref<8x32xf32, #tpu.memory_space<vmem>>, vector<8x32xf32>
    %c0_4 = arith.constant 0 : index
    %c0_5 = arith.constant 0 : index
    %11 = vector.load %arg6[%c0_4, %c0_5] : memref<8x32xf32, #tpu.memory_space<vmem>>, vector<8x32xf32>
    %c0_i32_6 = arith.constant 0 : i32
    %c4_i32 = arith.constant 4 : i32
    %12 = arith.muli %c0_i32_6, %c4_i32 : i32
    %c0_i32_7 = arith.constant 0 : i32
    %13 = arith.addi %12, %c0_i32_7 : i32
    %14 = arith.index_cast %13 : i32 to index
    %c0_8 = arith.constant 0 : index
    %c0_9 = arith.constant 0 : index
    %15 = vector.load %arg2[%14, %c0_8, %c0_9] : memref<8x8x128xf32, #tpu.memory_space<vmem>>, vector<1x8x128xf32>
    %16 = vector.shape_cast %15 : vector<1x8x128xf32> to vector<8x128xf32>
    %cst = arith.constant dense<0.000000e+00> : vector<8x128xf32>
    %17 = tpu.matmul %10, %9, %cst {dimension_numbers = #tpu.dot_dimension_numbers<[1], [0], [0], [1], [0, 0, 1, 1], [], []>} : vector<8x32xf32>, vector<32x128xf32>, vector<8x128xf32> -> vector<8x128xf32>
    %18 = arith.addf %16, %17 : vector<8x128xf32>
    %19 = math.tanh %18 : vector<8x128xf32>
    %cst_10 = arith.constant 1.000000e+00 : f32
    %20 = vector.broadcast %cst_10 : f32 to vector<8x128xf32>
    %21 = arith.addf %19, %20 : vector<8x128xf32>
    %cst_11 = arith.constant 5.000000e-01 : f32
    %22 = vector.broadcast %cst_11 : f32 to vector<8x128xf32>
    %23 = arith.mulf %22, %21 : vector<8x128xf32>
    %24 = arith.select %8, %19, %23 : vector<8x128xi1>, vector<8x128xf32>
    %25 = vector.extract_strided_slice %24 {offsets = [0, 0], sizes = [8, 32], strides = [1, 1]} : vector<8x128xf32> to vector<8x32xf32>
    %26 = vector.extract_strided_slice %24 {offsets = [0, 32], sizes = [8, 32], strides = [1, 1]} : vector<8x128xf32> to vector<8x32xf32>
    %27 = vector.extract_strided_slice %24 {offsets = [0, 64], sizes = [8, 32], strides = [1, 1]} : vector<8x128xf32> to vector<8x32xf32>
    %28 = vector.extract_strided_slice %24 {offsets = [0, 96], sizes = [8, 32], strides = [1, 1]} : vector<8x128xf32> to vector<8x32xf32>
    %29 = arith.mulf %26, %11 : vector<8x32xf32>
    %30 = arith.mulf %25, %27 : vector<8x32xf32>
    %31 = arith.addf %29, %30 : vector<8x32xf32>
    %32 = math.tanh %31 : vector<8x32xf32>
    %33 = arith.mulf %28, %32 : vector<8x32xf32>
    %c0_12 = arith.constant 0 : index
    %c0_13 = arith.constant 0 : index
    %34 = vector.load %arg7[%c0_12, %c0_13] : memref<8x128xf32, #tpu.memory_space<vmem>>, vector<8x32xf32>
    tpu.vector_store %arg7[%c0_12, %c0_13], %33 {strides = array<i32>} : memref<8x128xf32, #tpu.memory_space<vmem>>, vector<8x32xf32>,
    %c4_i32_14 = arith.constant 4 : i32
    %35 = arith.muli %c0_i32_6, %c4_i32_14 : i32
    %c1_i32 = arith.constant 1 : i32
    %36 = arith.addi %35, %c1_i32 : i32
    %37 = arith.index_cast %36 : i32 to index
    %c0_15 = arith.constant 0 : index
    %c0_16 = arith.constant 0 : index
    %38 = vector.load %arg2[%37, %c0_15, %c0_16] : memref<8x8x128xf32, #tpu.memory_space<vmem>>, vector<1x8x128xf32>
    %39 = vector.shape_cast %38 : vector<1x8x128xf32> to vector<8x128xf32>
    %cst_17 = arith.constant dense<0.000000e+00> : vector<8x128xf32>
    %40 = tpu.matmul %33, %9, %cst_17 {dimension_numbers = #tpu.dot_dimension_numbers<[1], [0], [0], [1], [0, 0, 1, 1], [], []>} : vector<8x32xf32>, vector<32x128xf32>, vector<8x128xf32> -> vector<8x128xf32>
    %41 = arith.addf %39, %40 : vector<8x128xf32>
    %42 = math.tanh %41 : vector<8x128xf32>
    %cst_18 = arith.constant 1.000000e+00 : f32
    %43 = vector.broadcast %cst_18 : f32 to vector<8x128xf32>
    %44 = arith.addf %42, %43 : vector<8x128xf32>
    %cst_19 = arith.constant 5.000000e-01 : f32
    %45 = vector.broadcast %cst_19 : f32 to vector<8x128xf32>
    %46 = arith.mulf %45, %44 : vector<8x128xf32>
    %47 = arith.select %8, %42, %46 : vector<8x128xi1>, vector<8x128xf32>
    %48 = vector.extract_strided_slice %47 {offsets = [0, 0], sizes = [8, 32], strides = [1, 1]} : vector<8x128xf32> to vector<8x32xf32>
    %49 = vector.extract_strided_slice %47 {offsets = [0, 32], sizes = [8, 32], strides = [1, 1]} : vector<8x128xf32> to vector<8x32xf32>
    %50 = vector.extract_strided_slice %47 {offsets = [0, 64], sizes = [8, 32], strides = [1, 1]} : vector<8x128xf32> to vector<8x32xf32>
    %51 = vector.extract_strided_slice %47 {offsets = [0, 96], sizes = [8, 32], strides = [1, 1]} : vector<8x128xf32> to vector<8x32xf32>
    %52 = arith.mulf %49, %31 : vector<8x32xf32>
    %53 = arith.mulf %48, %50 : vector<8x32xf32>
    %54 = arith.addf %52, %53 : vector<8x32xf32>
    %55 = math.tanh %54 : vector<8x32xf32>
    %56 = arith.mulf %51, %55 : vector<8x32xf32>
    %c0_20 = arith.constant 0 : index
    %c32 = arith.constant 32 : index
    %57 = vector.load %arg7[%c0_20, %c32] : memref<8x128xf32, #tpu.memory_space<vmem>>, vector<8x32xf32>
    tpu.vector_store %arg7[%c0_20, %c32], %56 {strides = array<i32>} : memref<8x128xf32, #tpu.memory_space<vmem>>, vector<8x32xf32>,
    %c4_i32_21 = arith.constant 4 : i32
    %58 = arith.muli %c0_i32_6, %c4_i32_21 : i32
    %c2_i32 = arith.constant 2 : i32
    %59 = arith.addi %58, %c2_i32 : i32
    %60 = arith.index_cast %59 : i32 to index
    %c0_22 = arith.constant 0 : index
    %c0_23 = arith.constant 0 : index
    %61 = vector.load %arg2[%60, %c0_22, %c0_23] : memref<8x8x128xf32, #tpu.memory_space<vmem>>, vector<1x8x128xf32>
    %62 = vector.shape_cast %61 : vector<1x8x128xf32> to vector<8x128xf32>
    %cst_24 = arith.constant dense<0.000000e+00> : vector<8x128xf32>
    %63 = tpu.matmul %56, %9, %cst_24 {dimension_numbers = #tpu.dot_dimension_numbers<[1], [0], [0], [1], [0, 0, 1, 1], [], []>} : vector<8x32xf32>, vector<32x128xf32>, vector<8x128xf32> -> vector<8x128xf32>
    %64 = arith.addf %62, %63 : vector<8x128xf32>
    %65 = math.tanh %64 : vector<8x128xf32>
    %cst_25 = arith.constant 1.000000e+00 : f32
    %66 = vector.broadcast %cst_25 : f32 to vector<8x128xf32>
    %67 = arith.addf %65, %66 : vector<8x128xf32>
    %cst_26 = arith.constant 5.000000e-01 : f32
    %68 = vector.broadcast %cst_26 : f32 to vector<8x128xf32>
    %69 = arith.mulf %68, %67 : vector<8x128xf32>
    %70 = arith.select %8, %65, %69 : vector<8x128xi1>, vector<8x128xf32>
    %71 = vector.extract_strided_slice %70 {offsets = [0, 0], sizes = [8, 32], strides = [1, 1]} : vector<8x128xf32> to vector<8x32xf32>
    %72 = vector.extract_strided_slice %70 {offsets = [0, 32], sizes = [8, 32], strides = [1, 1]} : vector<8x128xf32> to vector<8x32xf32>
    %73 = vector.extract_strided_slice %70 {offsets = [0, 64], sizes = [8, 32], strides = [1, 1]} : vector<8x128xf32> to vector<8x32xf32>
    %74 = vector.extract_strided_slice %70 {offsets = [0, 96], sizes = [8, 32], strides = [1, 1]} : vector<8x128xf32> to vector<8x32xf32>
    %75 = arith.mulf %72, %54 : vector<8x32xf32>
    %76 = arith.mulf %71, %73 : vector<8x32xf32>
    %77 = arith.addf %75, %76 : vector<8x32xf32>
    %78 = math.tanh %77 : vector<8x32xf32>
    %79 = arith.mulf %74, %78 : vector<8x32xf32>
    %c0_27 = arith.constant 0 : index
    %c64 = arith.constant 64 : index
    %80 = vector.load %arg7[%c0_27, %c64] : memref<8x128xf32, #tpu.memory_space<vmem>>, vector<8x32xf32>
    tpu.vector_store %arg7[%c0_27, %c64], %79 {strides = array<i32>} : memref<8x128xf32, #tpu.memory_space<vmem>>, vector<8x32xf32>,
    %c4_i32_28 = arith.constant 4 : i32
    %81 = arith.muli %c0_i32_6, %c4_i32_28 : i32
    %c3_i32 = arith.constant 3 : i32
    %82 = arith.addi %81, %c3_i32 : i32
    %83 = arith.index_cast %82 : i32 to index
    %c0_29 = arith.constant 0 : index
    %c0_30 = arith.constant 0 : index
    %84 = vector.load %arg2[%83, %c0_29, %c0_30] : memref<8x8x128xf32, #tpu.memory_space<vmem>>, vector<1x8x128xf32>
    %85 = vector.shape_cast %84 : vector<1x8x128xf32> to vector<8x128xf32>
    %cst_31 = arith.constant dense<0.000000e+00> : vector<8x128xf32>
    %86 = tpu.matmul %79, %9, %cst_31 {dimension_numbers = #tpu.dot_dimension_numbers<[1], [0], [0], [1], [0, 0, 1, 1], [], []>} : vector<8x32xf32>, vector<32x128xf32>, vector<8x128xf32> -> vector<8x128xf32>
    %87 = arith.addf %85, %86 : vector<8x128xf32>
    %88 = math.tanh %87 : vector<8x128xf32>
    %cst_32 = arith.constant 1.000000e+00 : f32
    %89 = vector.broadcast %cst_32 : f32 to vector<8x128xf32>
    %90 = arith.addf %88, %89 : vector<8x128xf32>
    %cst_33 = arith.constant 5.000000e-01 : f32
    %91 = vector.broadcast %cst_33 : f32 to vector<8x128xf32>
    %92 = arith.mulf %91, %90 : vector<8x128xf32>
    %93 = arith.select %8, %88, %92 : vector<8x128xi1>, vector<8x128xf32>
    %94 = vector.extract_strided_slice %93 {offsets = [0, 0], sizes = [8, 32], strides = [1, 1]} : vector<8x128xf32> to vector<8x32xf32>
    %95 = vector.extract_strided_slice %93 {offsets = [0, 32], sizes = [8, 32], strides = [1, 1]} : vector<8x128xf32> to vector<8x32xf32>
    %96 = vector.extract_strided_slice %93 {offsets = [0, 64], sizes = [8, 32], strides = [1, 1]} : vector<8x128xf32> to vector<8x32xf32>
    %97 = vector.extract_strided_slice %93 {offsets = [0, 96], sizes = [8, 32], strides = [1, 1]} : vector<8x128xf32> to vector<8x32xf32>
    %98 = arith.mulf %95, %77 : vector<8x32xf32>
    %99 = arith.mulf %94, %96 : vector<8x32xf32>
    %100 = arith.addf %98, %99 : vector<8x32xf32>
    %101 = math.tanh %100 : vector<8x32xf32>
    %102 = arith.mulf %97, %101 : vector<8x32xf32>
    %c0_34 = arith.constant 0 : index
    %c96 = arith.constant 96 : index
    %103 = vector.load %arg7[%c0_34, %c96] : memref<8x128xf32, #tpu.memory_space<vmem>>, vector<8x32xf32>
    tpu.vector_store %arg7[%c0_34, %c96], %102 {strides = array<i32>} : memref<8x128xf32, #tpu.memory_space<vmem>>, vector<8x32xf32>,
    %c0_35 = arith.constant 0 : index
    %c0_36 = arith.constant 0 : index
    %104 = vector.load %arg7[%c0_35, %c0_36] : memref<8x128xf32, #tpu.memory_space<vmem>>, vector<8x128xf32>
    %105 = arith.index_cast %c0_i32_6 : i32 to index
    %c0_37 = arith.constant 0 : index
    %c0_38 = arith.constant 0 : index
    %106 = vector.load %arg4[%105, %c0_37, %c0_38] : memref<2x8x128xf32, #tpu.memory_space<vmem>>, vector<1x8x128xf32>
    %107 = vector.shape_cast %106 : vector<1x8x128xf32> to vector<8x128xf32>
    %108 = vector.shape_cast %104 : vector<8x128xf32> to vector<1x8x128xf32>
    tpu.vector_store %arg4[%105, %c0_37, %c0_38], %108 {strides = array<i32>} : memref<2x8x128xf32, #tpu.memory_space<vmem>>, vector<1x8x128xf32>,
    %c1_i32_39 = arith.constant 1 : i32
    %c4_i32_40 = arith.constant 4 : i32
    %109 = arith.muli %c1_i32_39, %c4_i32_40 : i32
    %c0_i32_41 = arith.constant 0 : i32
    %110 = arith.addi %109, %c0_i32_41 : i32
    %111 = arith.index_cast %110 : i32 to index
    %c0_42 = arith.constant 0 : index
    %c0_43 = arith.constant 0 : index
    %112 = vector.load %arg2[%111, %c0_42, %c0_43] : memref<8x8x128xf32, #tpu.memory_space<vmem>>, vector<1x8x128xf32>
    %113 = vector.shape_cast %112 : vector<1x8x128xf32> to vector<8x128xf32>
    %cst_44 = arith.constant dense<0.000000e+00> : vector<8x128xf32>
    %114 = tpu.matmul %102, %9, %cst_44 {dimension_numbers = #tpu.dot_dimension_numbers<[1], [0], [0], [1], [0, 0, 1, 1], [], []>} : vector<8x32xf32>, vector<32x128xf32>, vector<8x128xf32> -> vector<8x128xf32>
    %115 = arith.addf %113, %114 : vector<8x128xf32>
    %116 = math.tanh %115 : vector<8x128xf32>
    %cst_45 = arith.constant 1.000000e+00 : f32
    %117 = vector.broadcast %cst_45 : f32 to vector<8x128xf32>
    %118 = arith.addf %116, %117 : vector<8x128xf32>
    %cst_46 = arith.constant 5.000000e-01 : f32
    %119 = vector.broadcast %cst_46 : f32 to vector<8x128xf32>
    %120 = arith.mulf %119, %118 : vector<8x128xf32>
    %121 = arith.select %8, %116, %120 : vector<8x128xi1>, vector<8x128xf32>
    %122 = vector.extract_strided_slice %121 {offsets = [0, 0], sizes = [8, 32], strides = [1, 1]} : vector<8x128xf32> to vector<8x32xf32>
    %123 = vector.extract_strided_slice %121 {offsets = [0, 32], sizes = [8, 32], strides = [1, 1]} : vector<8x128xf32> to vector<8x32xf32>
    %124 = vector.extract_strided_slice %121 {offsets = [0, 64], sizes = [8, 32], strides = [1, 1]} : vector<8x128xf32> to vector<8x32xf32>
    %125 = vector.extract_strided_slice %121 {offsets = [0, 96], sizes = [8, 32], strides = [1, 1]} : vector<8x128xf32> to vector<8x32xf32>
    %126 = arith.mulf %123, %100 : vector<8x32xf32>
    %127 = arith.mulf %122, %124 : vector<8x32xf32>
    %128 = arith.addf %126, %127 : vector<8x32xf32>
    %129 = math.tanh %128 : vector<8x32xf32>
    %130 = arith.mulf %125, %129 : vector<8x32xf32>
    %c0_47 = arith.constant 0 : index
    %c0_48 = arith.constant 0 : index
    %131 = vector.load %arg7[%c0_47, %c0_48] : memref<8x128xf32, #tpu.memory_space<vmem>>, vector<8x32xf32>
    tpu.vector_store %arg7[%c0_47, %c0_48], %130 {strides = array<i32>} : memref<8x128xf32, #tpu.memory_space<vmem>>, vector<8x32xf32>,
    %c4_i32_49 = arith.constant 4 : i32
    %132 = arith.muli %c1_i32_39, %c4_i32_49 : i32
    %c1_i32_50 = arith.constant 1 : i32
    %133 = arith.addi %132, %c1_i32_50 : i32
    %134 = arith.index_cast %133 : i32 to index
    %c0_51 = arith.constant 0 : index
    %c0_52 = arith.constant 0 : index
    %135 = vector.load %arg2[%134, %c0_51, %c0_52] : memref<8x8x128xf32, #tpu.memory_space<vmem>>, vector<1x8x128xf32>
    %136 = vector.shape_cast %135 : vector<1x8x128xf32> to vector<8x128xf32>
    %cst_53 = arith.constant dense<0.000000e+00> : vector<8x128xf32>
    %137 = tpu.matmul %130, %9, %cst_53 {dimension_numbers = #tpu.dot_dimension_numbers<[1], [0], [0], [1], [0, 0, 1, 1], [], []>} : vector<8x32xf32>, vector<32x128xf32>, vector<8x128xf32> -> vector<8x128xf32>
    %138 = arith.addf %136, %137 : vector<8x128xf32>
    %139 = math.tanh %138 : vector<8x128xf32>
    %cst_54 = arith.constant 1.000000e+00 : f32
    %140 = vector.broadcast %cst_54 : f32 to vector<8x128xf32>
    %141 = arith.addf %139, %140 : vector<8x128xf32>
    %cst_55 = arith.constant 5.000000e-01 : f32
    %142 = vector.broadcast %cst_55 : f32 to vector<8x128xf32>
    %143 = arith.mulf %142, %141 : vector<8x128xf32>
    %144 = arith.select %8, %139, %143 : vector<8x128xi1>, vector<8x128xf32>
    %145 = vector.extract_strided_slice %144 {offsets = [0, 0], sizes = [8, 32], strides = [1, 1]} : vector<8x128xf32> to vector<8x32xf32>
    %146 = vector.extract_strided_slice %144 {offsets = [0, 32], sizes = [8, 32], strides = [1, 1]} : vector<8x128xf32> to vector<8x32xf32>
    %147 = vector.extract_strided_slice %144 {offsets = [0, 64], sizes = [8, 32], strides = [1, 1]} : vector<8x128xf32> to vector<8x32xf32>
    %148 = vector.extract_strided_slice %144 {offsets = [0, 96], sizes = [8, 32], strides = [1, 1]} : vector<8x128xf32> to vector<8x32xf32>
    %149 = arith.mulf %146, %128 : vector<8x32xf32>
    %150 = arith.mulf %145, %147 : vector<8x32xf32>
    %151 = arith.addf %149, %150 : vector<8x32xf32>
    %152 = math.tanh %151 : vector<8x32xf32>
    %153 = arith.mulf %148, %152 : vector<8x32xf32>
    %c0_56 = arith.constant 0 : index
    %c32_57 = arith.constant 32 : index
    %154 = vector.load %arg7[%c0_56, %c32_57] : memref<8x128xf32, #tpu.memory_space<vmem>>, vector<8x32xf32>
    tpu.vector_store %arg7[%c0_56, %c32_57], %153 {strides = array<i32>} : memref<8x128xf32, #tpu.memory_space<vmem>>, vector<8x32xf32>,
    %c4_i32_58 = arith.constant 4 : i32
    %155 = arith.muli %c1_i32_39, %c4_i32_58 : i32
    %c2_i32_59 = arith.constant 2 : i32
    %156 = arith.addi %155, %c2_i32_59 : i32
    %157 = arith.index_cast %156 : i32 to index
    %c0_60 = arith.constant 0 : index
    %c0_61 = arith.constant 0 : index
    %158 = vector.load %arg2[%157, %c0_60, %c0_61] : memref<8x8x128xf32, #tpu.memory_space<vmem>>, vector<1x8x128xf32>
    %159 = vector.shape_cast %158 : vector<1x8x128xf32> to vector<8x128xf32>
    %cst_62 = arith.constant dense<0.000000e+00> : vector<8x128xf32>
    %160 = tpu.matmul %153, %9, %cst_62 {dimension_numbers = #tpu.dot_dimension_numbers<[1], [0], [0], [1], [0, 0, 1, 1], [], []>} : vector<8x32xf32>, vector<32x128xf32>, vector<8x128xf32> -> vector<8x128xf32>
    %161 = arith.addf %159, %160 : vector<8x128xf32>
    %162 = math.tanh %161 : vector<8x128xf32>
    %cst_63 = arith.constant 1.000000e+00 : f32
    %163 = vector.broadcast %cst_63 : f32 to vector<8x128xf32>
    %164 = arith.addf %162, %163 : vector<8x128xf32>
    %cst_64 = arith.constant 5.000000e-01 : f32
    %165 = vector.broadcast %cst_64 : f32 to vector<8x128xf32>
    %166 = arith.mulf %165, %164 : vector<8x128xf32>
    %167 = arith.select %8, %162, %166 : vector<8x128xi1>, vector<8x128xf32>
    %168 = vector.extract_strided_slice %167 {offsets = [0, 0], sizes = [8, 32], strides = [1, 1]} : vector<8x128xf32> to vector<8x32xf32>
    %169 = vector.extract_strided_slice %167 {offsets = [0, 32], sizes = [8, 32], strides = [1, 1]} : vector<8x128xf32> to vector<8x32xf32>
    %170 = vector.extract_strided_slice %167 {offsets = [0, 64], sizes = [8, 32], strides = [1, 1]} : vector<8x128xf32> to vector<8x32xf32>
    %171 = vector.extract_strided_slice %167 {offsets = [0, 96], sizes = [8, 32], strides = [1, 1]} : vector<8x128xf32> to vector<8x32xf32>
    %172 = arith.mulf %169, %151 : vector<8x32xf32>
    %173 = arith.mulf %168, %170 : vector<8x32xf32>
    %174 = arith.addf %172, %173 : vector<8x32xf32>
    %175 = math.tanh %174 : vector<8x32xf32>
    %176 = arith.mulf %171, %175 : vector<8x32xf32>
    %c0_65 = arith.constant 0 : index
    %c64_66 = arith.constant 64 : index
    %177 = vector.load %arg7[%c0_65, %c64_66] : memref<8x128xf32, #tpu.memory_space<vmem>>, vector<8x32xf32>
    tpu.vector_store %arg7[%c0_65, %c64_66], %176 {strides = array<i32>} : memref<8x128xf32, #tpu.memory_space<vmem>>, vector<8x32xf32>,
    %c4_i32_67 = arith.constant 4 : i32
    %178 = arith.muli %c1_i32_39, %c4_i32_67 : i32
    %c3_i32_68 = arith.constant 3 : i32
    %179 = arith.addi %178, %c3_i32_68 : i32
    %180 = arith.index_cast %179 : i32 to index
    %c0_69 = arith.constant 0 : index
    %c0_70 = arith.constant 0 : index
    %181 = vector.load %arg2[%180, %c0_69, %c0_70] : memref<8x8x128xf32, #tpu.memory_space<vmem>>, vector<1x8x128xf32>
    %182 = vector.shape_cast %181 : vector<1x8x128xf32> to vector<8x128xf32>
    %cst_71 = arith.constant dense<0.000000e+00> : vector<8x128xf32>
    %183 = tpu.matmul %176, %9, %cst_71 {dimension_numbers = #tpu.dot_dimension_numbers<[1], [0], [0], [1], [0, 0, 1, 1], [], []>} : vector<8x32xf32>, vector<32x128xf32>, vector<8x128xf32> -> vector<8x128xf32>
    %184 = arith.addf %182, %183 : vector<8x128xf32>
    %185 = math.tanh %184 : vector<8x128xf32>
    %cst_72 = arith.constant 1.000000e+00 : f32
    %186 = vector.broadcast %cst_72 : f32 to vector<8x128xf32>
    %187 = arith.addf %185, %186 : vector<8x128xf32>
    %cst_73 = arith.constant 5.000000e-01 : f32
    %188 = vector.broadcast %cst_73 : f32 to vector<8x128xf32>
    %189 = arith.mulf %188, %187 : vector<8x128xf32>
    %190 = arith.select %8, %185, %189 : vector<8x128xi1>, vector<8x128xf32>
    %191 = vector.extract_strided_slice %190 {offsets = [0, 0], sizes = [8, 32], strides = [1, 1]} : vector<8x128xf32> to vector<8x32xf32>
    %192 = vector.extract_strided_slice %190 {offsets = [0, 32], sizes = [8, 32], strides = [1, 1]} : vector<8x128xf32> to vector<8x32xf32>
    %193 = vector.extract_strided_slice %190 {offsets = [0, 64], sizes = [8, 32], strides = [1, 1]} : vector<8x128xf32> to vector<8x32xf32>
    %194 = vector.extract_strided_slice %190 {offsets = [0, 96], sizes = [8, 32], strides = [1, 1]} : vector<8x128xf32> to vector<8x32xf32>
    %195 = arith.mulf %192, %174 : vector<8x32xf32>
    %196 = arith.mulf %191, %193 : vector<8x32xf32>
    %197 = arith.addf %195, %196 : vector<8x32xf32>
    %198 = math.tanh %197 : vector<8x32xf32>
    %199 = arith.mulf %194, %198 : vector<8x32xf32>
    %c0_74 = arith.constant 0 : index
    %c96_75 = arith.constant 96 : index
    %200 = vector.load %arg7[%c0_74, %c96_75] : memref<8x128xf32, #tpu.memory_space<vmem>>, vector<8x32xf32>
    tpu.vector_store %arg7[%c0_74, %c96_75], %199 {strides = array<i32>} : memref<8x128xf32, #tpu.memory_space<vmem>>, vector<8x32xf32>,
    %c0_76 = arith.constant 0 : index
    %c0_77 = arith.constant 0 : index
    %201 = vector.load %arg7[%c0_76, %c0_77] : memref<8x128xf32, #tpu.memory_space<vmem>>, vector<8x128xf32>
    %202 = arith.index_cast %c1_i32_39 : i32 to index
    %c0_78 = arith.constant 0 : index
    %c0_79 = arith.constant 0 : index
    %203 = vector.load %arg4[%202, %c0_78, %c0_79] : memref<2x8x128xf32, #tpu.memory_space<vmem>>, vector<1x8x128xf32>
    %204 = vector.shape_cast %203 : vector<1x8x128xf32> to vector<8x128xf32>
    %205 = vector.shape_cast %201 : vector<8x128xf32> to vector<1x8x128xf32>
    tpu.vector_store %arg4[%202, %c0_78, %c0_79], %205 {strides = array<i32>} : memref<2x8x128xf32, #tpu.memory_space<vmem>>, vector<1x8x128xf32>,
    %c2_i32_80 = arith.constant 2 : i32
    %c0_81 = arith.constant 0 : index
    %c0_82 = arith.constant 0 : index
    %206 = vector.load %arg5[%c0_81, %c0_82] : memref<8x32xf32, #tpu.memory_space<vmem>>, vector<8x32xf32>
    tpu.vector_store %arg5[%c0_81, %c0_82], %199 {strides = array<i32>} : memref<8x32xf32, #tpu.memory_space<vmem>>, vector<8x32xf32>,
    %c0_83 = arith.constant 0 : index
    %c0_84 = arith.constant 0 : index
    %207 = vector.load %arg6[%c0_83, %c0_84] : memref<8x32xf32, #tpu.memory_space<vmem>>, vector<8x32xf32>
    tpu.vector_store %arg6[%c0_83, %c0_84], %197 {strides = array<i32>} : memref<8x32xf32, #tpu.memory_space<vmem>>, vector<8x32xf32>,
    return
  }
  func.func @transform_0(%arg0: i32, %arg1: i32) -> (i32, i32, i32) {
    %c0_i32 = arith.constant 0 : i32
    %c0_i32_0 = arith.constant 0 : i32
    return %arg1, %arg0, %c0_i32 : i32, i32, i32
  }
  func.func @transform_1(%arg0: i32, %arg1: i32) -> (i32, i32) {
    %c0_i32 = arith.constant 0 : i32
    %c0_i32_0 = arith.constant 0 : i32
    %c0_i32_1 = arith.constant 0 : i32
    return %c0_i32, %c0_i32_0 : i32, i32
  }
  func.func @transform_2(%arg0: i32, %arg1: i32) -> (i32, i32, i32) {
    %c0_i32 = arith.constant 0 : i32
    %c0_i32_0 = arith.constant 0 : i32
    return %arg1, %arg0, %c0_i32 : i32, i32, i32
  }
}

</mosaic_0001>

<bundles_post_ra>
// kernel: generator_forward.1
= control target key start
LH: loop header
LB: loop body
LE: loop exit
PB: predicated region body
PF: predicated region fallthrough
CT: control target
= control target key end

     0   :  { %vm15_vm0 = vcmask 261120   ;;  %v1097_v0 = vmov 0.0|0.0   ;;  %vm1098_vm1 = vmmov 0   ;;  %v1099_v4 = vmov 0.0   ;;  %s1100_s18 = smov 64   ;;  %s1101_s19 = smov 32   ;;  %s1301_s1 = inlined_call_operand.vmem [shape: f32[32,128], index: 1, kind: input, shape index: {}]   ;;  %s1302_s0 = inlined_call_operand.vmem [shape: f32[8,8,128], index: 0, kind: input, shape index: {}]   ;;  %s1303_s2 = inlined_call_operand.vmem [shape: f32[2,8,128], index: 2, kind: output, shape index: {}]  }
   0x1   :  { %1011 = vmatprep.subr.bf16.mxu0 %v1097_v0  ;;  %v23_v1 = vld [vmem:[%s1301_s1] sm:$0xff]  ;;  %v24_v2 = vld [vmem:[%s1301_s1 + $0x8] sm:$0xff]  ;;  %v25_v3 = vld [vmem:[%s1301_s1 + $0x10] sm:$0xff]  ;;  %931 = vmatprep.mubr.msk.f32.mxu0 %vm1098_vm1, %v1099_v4  ;;  %16 = vst.msk [vmem:[#allocation2] sm:$0xff] %vm15_vm0, %v1099_v4  ;;  %v18_v13 = vlaneseq  ;;  %vm235_vm5 = vcmask 523520   ;;  %vm339_vm6 = vcmask 785920  }
   0x2   :  { %17 = vst.msk [vmem:[#allocation3] sm:$0xff] %vm15_vm0, %v1099_v4  ;;  %v1134_v5 = vpack.c.bf16 %v24_v2, %v23_v1  ;;  %v26_v6 = vld [vmem:[%s1301_s1 + $0x18] sm:$0xff]  ;;  %1017 = vmatprep.subr.bf16.mxu1 %v1097_v0  ;;  %942 = vmatprep.mubr.msk.f32.mxu1 %vm1098_vm1, %v1099_v4  ;;  %v29_v9 = vld [vmem:[%s1302_s0] sm:$0xff]  ;;  %v868_v31 = vld [vmem:[%s1302_s0 + $0x8] sm:$0xff]  ;;  %vm439_vm7 = vcmask 1048320  }
   0x3   :  { %v1143_v7 = vpack.c.bf16 %v26_v6, %v25_v3  ;;  %v19_v14 = vand.u32 127, %v18_v13  ;;  %v870_v48 = vld [vmem:[%s1302_s0 + $0x10] sm:$0xff]  ;;  %v872_v2 = vld [vmem:[%s1302_s0 + $0x18] sm:$0xff] }
   0x4   :  { %1013 = vmatpush3.bf16.msra.mxu0 %v1134_v5  ;;  %1019 = vmatpush3.bf16.msra.mxu1 %v1134_v5 }
   0x5   :  { %1014 = vmatprep.subr.bf16.mxu0 %v1097_v0  ;;  %1020 = vmatprep.subr.bf16.mxu1 %v1097_v0  ;;  %vm20_vm2 = vcmp.ge.s32.totalorder %v19_v14, 64  ;;  %vm21_vm3 = vcmp.lt.s32.totalorder %v19_v14, 96 }
   0x6   :  { %vm1162_vm4 = vmand %vm20_vm2, %vm21_vm3 }
   0x8   :  { %1016 = vmatpush3.bf16.msra.mxu0 %v1143_v7  ;;  %v27_v8 = vld [vmem:[#allocation2] sm:$0xff]  ;;  %1022 = vmatpush3.bf16.msra.mxu1 %v1143_v7 }
   0x9   :  { %1023 = vmatprep.subr.bf16.mxu0 %v1097_v0  ;;  %1029 = vmatprep.subr.bf16.mxu1 %v1097_v0  ;;  %v28_v20 = vld [vmem:[#allocation3] sm:$0xff] }
   0xb   :  { %932 = vmatmul.mubr.msk.f32.vlgmr.msra.gmra.mrb[0].mxu0 %vm15_vm0, %v27_v8 }
   0xc   :  { %1025 = vmatpush3.bf16.msra.mxu0 %v1134_v5  ;;  %953 = vmatprep.mubr.msk.f32.mxu0 %vm1098_vm1, %v1099_v4 }
   0xd   :  { %1026 = vmatprep.subr.bf16.mxu0 %v1097_v0 }
  0x10   :  { %1028 = vmatpush3.bf16.msra.mxu0 %v1143_v7 }
  0x11   :  { %1035 = vmatprep.subr.bf16.mxu0 %v1097_v0 }
  0xde   :  { %v100_v10 = vpop.f32.mrb[0].mxu0 }
  0xdf   :  { %v104_v11 = vadd.f32 %v100_v10, %v29_v9  ;;  %v933_v12 = vpop.f32.mrb[1].mxu0 }
  0xe1   :  { %1065 = vtanh.f32 %v104_v11 }
  0xeb   :  { %v1066_v15 = vpop.eup %1065 }
  0xec   :  { %v106_v16 = vadd.f32 1.0, %v1066_v15 }
  0xee   :  { %v107_v18 = vmul.f32 0.5, %v106_v16 }
  0xf0   :  { %v108_v19 = vsel %vm1162_vm4, %v1066_v15, %v107_v18 }
  0xf1   :  { %115 = vrot.lane.b32.xlu0 %v108_v19, %s1100_s18 }
  0xf5   :  { %110 = vrot.lane.b32.xlu0 %v28_v20, %s1101_s19 }
 0x163   :  { %v116_v21 = vpop.permute.xlu0 %115 }
 0x164   :  { %v118_v22 = vmul.f32 %v116_v21, %v108_v19 }
 0x166   :  { %120 = vrot.lane.b32.xlu1 %v118_v22, %s1101_s19 }
 0x167   :  { %v111_v23 = vpop.permute.xlu0 %110 }
 0x168   :  { %v113_v24 = vmul.f32 %v111_v23, %v108_v19  ;;  %v874_v23 = vld [vmem:[%s1302_s0 + $0x20] sm:$0xff] }
 0x1d8   :  { %v121_v25 = vpop.permute.xlu1 %120 }
 0x1d9   :  { %v123_v26 = vadd.f32 %v121_v25, %v113_v24 }
 0x1db   :  { %1067 = vtanh.f32 %v123_v26 }
 0x1e5   :  { %v1068_v27 = vpop.eup %1067 }
 0x1e6   :  { %126 = vrot.lane.b32.xlu1 %v1068_v27, %s1100_s18 }
 0x258   :  { %v127_v28 = vpop.permute.xlu1 %126 }
 0x259   :  { %v129_v29 = vmul.f32 %v127_v28, %v108_v19 }
 0x25b   :  { %131 = vrot.lane.b32.xlu0 %v129_v29, %s1101_s19 }
 0x2cd   :  { %v132_v30 = vpop.permute.xlu0 %131 }
 0x2ce   :  { %134 = vst.msk [vmem:[#allocation4] sm:$0xff] %vm15_vm0, %v132_v30  ;;  %943 = vmatmul.mubr.msk.f32.vlgmr.msra.gmra.mrb[0].mxu1 %vm15_vm0, %v132_v30 }
 0x2cf   :  { %1031 = vmatpush3.bf16.msra.mxu1 %v1134_v5  ;;  %964 = vmatprep.mubr.msk.f32.mxu1 %vm1098_vm1, %v1099_v4 }
 0x2d0   :  { %1032 = vmatprep.subr.bf16.mxu1 %v1097_v0 }
 0x2d3   :  { %1034 = vmatpush3.bf16.msra.mxu1 %v1143_v7 }
 0x2d4   :  { %1041 = vmatprep.subr.bf16.mxu1 %v1097_v0 }
 0x3a1   :  { %v205_v32 = vpop.f32.mrb[0].mxu1 }
 0x3a2   :  { %v209_v33 = vadd.f32 %v868_v31, %v205_v32  ;;  %v944_v34 = vpop.f32.mrb[1].mxu1 }
 0x3a4   :  { %1069 = vtanh.f32 %v209_v33 }
 0x3ae   :  { %v1070_v35 = vpop.eup %1069 }
 0x3af   :  { %v211_v36 = vadd.f32 1.0, %v1070_v35 }
 0x3b1   :  { %v212_v37 = vmul.f32 0.5, %v211_v36 }
 0x3b3   :  { %v213_v38 = vsel %vm1162_vm4, %v1070_v35, %v212_v37 }
 0x3b4   :  { %216 = vrot.lane.b32.xlu1 %v213_v38, %s1100_s18  ;;  %v214_v41 = vmul.f32 %v213_v38, %v123_v26 }
 0x426   :  { %v217_v39 = vpop.permute.xlu1 %216 }
 0x427   :  { %v219_v40 = vmul.f32 %v217_v39, %v213_v38 }
 0x429   :  { %221 = vrot.lane.b32.xlu0 %v219_v40, %s1101_s19  ;;  %v876_v40 = vld [vmem:[%s1302_s0 + $0x28] sm:$0xff] }
 0x49b   :  { %v222_v42 = vpop.permute.xlu0 %221 }
 0x49c   :  { %v224_v43 = vadd.f32 %v222_v42, %v214_v41 }
 0x49e   :  { %1071 = vtanh.f32 %v224_v43 }
 0x4a8   :  { %v1072_v44 = vpop.eup %1071 }
 0x4a9   :  { %227 = vrot.lane.b32.xlu1 %v1072_v44, %s1100_s18 }
 0x51b   :  { %v228_v45 = vpop.permute.xlu1 %227 }
 0x51c   :  { %v1189_v46 = vmul.f32 %v228_v45, %v213_v38 }
 0x51e   :  { %239 = vrot.lane.b32.xlu0 %v1189_v46, %s1101_s19 }
 0x590   :  { %v240_v47 = vpop.permute.xlu0 %239 }
 0x591   :  { %954 = vmatmul.mubr.msk.f32.vlgmr.msra.gmra.mrb[2].mxu0 %vm15_vm0, %v240_v47 }
 0x592   :  { %1037 = vmatpush3.bf16.msra.mxu0 %v1134_v5  ;;  %975 = vmatprep.mubr.msk.f32.mxu0 %vm1098_vm1, %v1099_v4 }
 0x593   :  { %1038 = vmatprep.subr.bf16.mxu0 %v1097_v0 }
 0x596   :  { %1040 = vmatpush3.bf16.msra.mxu0 %v1143_v7 }
 0x597   :  { %1047 = vmatprep.subr.bf16.mxu0 %v1097_v0 }
 0x664   :  { %v309_v49 = vpop.f32.mrb[2].mxu0 }
 0x665   :  { %v313_v50 = vadd.f32 %v870_v48, %v309_v49  ;;  %v955_v51 = vpop.f32.mrb[3].mxu0 }
 0x667   :  { %1073 = vtanh.f32 %v313_v50 }
 0x671   :  { %v1074_v52 = vpop.eup %1073 }
 0x672   :  { %v315_v53 = vadd.f32 1.0, %v1074_v52 }
 0x674   :  { %v316_v54 = vmul.f32 0.5, %v315_v53 }
 0x676   :  { %v317_v55 = vsel %vm1162_vm4, %v1074_v52, %v316_v54  ;;  %v878_v54 = vld [vmem:[%s1302_s0 + $0x30] sm:$0xff] }
 0x677   :  { %320 = vrot.lane.b32.xlu1 %v317_v55, %s1100_s18  ;;  %v318_v58 = vmul.f32 %v317_v55, %v224_v43 }
 0x6e9   :  { %v321_v56 = vpop.permute.xlu1 %320 }
 0x6ea   :  { %v323_v57 = vmul.f32 %v321_v56, %v317_v55 }
 0x6ec   :  { %325 = vrot.lane.b32.xlu0 %v323_v57, %s1101_s19 }
 0x75e   :  { %v326_v59 = vpop.permute.xlu0 %325 }
 0x75f   :  { %v328_v60 = vadd.f32 %v326_v59, %v318_v58 }
 0x761   :  { %1075 = vtanh.f32 %v328_v60 }
 0x76b   :  { %v1076_v61 = vpop.eup %1075 }
 0x76c   :  { %331 = vrot.lane.b32.xlu1 %v1076_v61, %s1100_s18 }
 0x7de   :  { %v332_v62 = vpop.permute.xlu1 %331 }
 0x7df   :  { %v1208_v63 = vmul.f32 %v332_v62, %v317_v55 }
 0x7e1   :  { %343 = vrot.lane.b32.xlu0 %v1208_v63, %s1101_s19 }
 0x853   :  { %v344_v1 = vpop.permute.xlu0 %343 }
 0x854   :  { %965 = vmatmul.mubr.msk.f32.vlgmr.msra.gmra.mrb[2].mxu1 %vm15_vm0, %v344_v1 }
 0x855   :  { %1043 = vmatpush3.bf16.msra.mxu1 %v1134_v5  ;;  %986 = vmatprep.mubr.msk.f32.mxu1 %vm1098_vm1, %v1099_v4 }
 0x856   :  { %1044 = vmatprep.subr.bf16.mxu1 %v1097_v0 }
 0x859   :  { %1046 = vmatpush3.bf16.msra.mxu1 %v1143_v7 }
 0x85a   :  { %1053 = vmatprep.subr.bf16.mxu1 %v1097_v0 }
 0x927   :  { %v413_v3 = vpop.f32.mrb[2].mxu1 }
 0x928   :  { %v417_v6 = vadd.f32 %v872_v2, %v413_v3  ;;  %v966_v8 = vpop.f32.mrb[3].mxu1 }
 0x92a   :  { %1077 = vtanh.f32 %v417_v6 }
 0x934   :  { %v1078_v9 = vpop.eup %1077 }
 0x935   :  { %v419_v10 = vadd.f32 1.0, %v1078_v9 }
 0x937   :  { %v420_v11 = vmul.f32 0.5, %v419_v10 }
 0x939   :  { %v421_v12 = vsel %vm1162_vm4, %v1078_v9, %v420_v11 }
 0x93a   :  { %424 = vrot.lane.b32.xlu1 %v421_v12, %s1100_s18  ;;  %v422_v15 = vmul.f32 %v421_v12, %v328_v60 }
 0x9ac   :  { %v425_v13 = vpop.permute.xlu1 %424 }
 0x9ad   :  { %v427_v14 = vmul.f32 %v425_v13, %v421_v12 }
 0x9af   :  { %429 = vrot.lane.b32.xlu0 %v427_v14, %s1101_s19 }
 0xa21   :  { %v430_v16 = vpop.permute.xlu0 %429 }
 0xa22   :  { %v432_v18 = vadd.f32 %v430_v16, %v422_v15 }
 0xa24   :  { %1079 = vtanh.f32 %v432_v18 }
 0xa2e   :  { %v1080_v19 = vpop.eup %1079 }
 0xa2f   :  { %435 = vrot.lane.b32.xlu1 %v1080_v19, %s1100_s18 }
 0xaa1   :  { %v436_v20 = vpop.permute.xlu1 %435 }
 0xaa2   :  { %v1227_v21 = vmul.f32 %v436_v20, %v421_v12  ;;  %v880_v12 = vld [vmem:[%s1302_s0 + $0x38] sm:$0xff]  ;;  %s1102_s0 = smov 96  }
 0xaa4   :  { %446 = vrot.lane.b32.xlu0 %v1227_v21, %s1101_s19 }
 0xb16   :  { %v447_v22 = vpop.permute.xlu0 %446 }
 0xb17   :  { %976 = vmatmul.mubr.msk.f32.vlgmr.msra.gmra.mrb[4].mxu0 %vm15_vm0, %v447_v22 }
 0xb18   :  { %1049 = vmatpush3.bf16.msra.mxu0 %v1134_v5  ;;  %997 = vmatprep.mubr.msk.f32.mxu0 %vm1098_vm1, %v1099_v4 }
 0xb19   :  { %1050 = vmatprep.subr.bf16.mxu0 %v1097_v0 }
 0xb1c   :  { %1052 = vmatpush3.bf16.msra.mxu0 %v1143_v7 }
 0xbea   :  { %v516_v24 = vpop.f32.mrb[4].mxu0 }
 0xbeb   :  { %v520_v25 = vadd.f32 %v874_v23, %v516_v24  ;;  %v977_v26 = vpop.f32.mrb[5].mxu0 }
 0xbed   :  { %1081 = vtanh.f32 %v520_v25 }
 0xbf7   :  { %v1082_v27 = vpop.eup %1081 }
 0xbf8   :  { %v522_v28 = vadd.f32 1.0, %v1082_v27 }
 0xbfa   :  { %v523_v29 = vmul.f32 0.5, %v522_v28 }
 0xbfc   :  { %v524_v30 = vsel %vm1162_vm4, %v1082_v27, %v523_v29 }
 0xbfd   :  { %527 = vrot.lane.b32.xlu1 %v524_v30, %s1100_s18  ;;  %v525_v33 = vmul.f32 %v524_v30, %v432_v18 }
 0xc6f   :  { %v528_v31 = vpop.permute.xlu1 %527 }
 0xc70   :  { %v530_v32 = vmul.f32 %v528_v31, %v524_v30 }
 0xc72   :  { %532 = vrot.lane.b32.xlu0 %v530_v32, %s1101_s19 }
 0xce4   :  { %v533_v34 = vpop.permute.xlu0 %532 }
 0xce5   :  { %v535_v35 = vadd.f32 %v533_v34, %v525_v33 }
 0xce7   :  { %1083 = vtanh.f32 %v535_v35 }
 0xcf1   :  { %v1084_v36 = vpop.eup %1083 }
 0xcf2   :  { %538 = vrot.lane.b32.xlu1 %v1084_v36, %s1100_s18 }
 0xd64   :  { %v539_v37 = vpop.permute.xlu1 %538 }
 0xd65   :  { %v541_v38 = vmul.f32 %v539_v37, %v524_v30 }
 0xd67   :  { %543 = vrot.lane.b32.xlu0 %v541_v38, %s1101_s19 }
 0xdd9   :  { %v1246_v39 = vpop.permute.xlu0 %543 }
 0xdda   :  { %987 = vmatmul.mubr.msk.f32.vlgmr.msra.gmra.mrb[4].mxu1 %vm15_vm0, %v1246_v39 }
 0xddb   :  { %1055 = vmatpush3.bf16.msra.mxu1 %v1134_v5  ;;  %1008 = vmatprep.mubr.msk.f32.mxu1 %vm1098_vm1, %v1099_v4 }
 0xddc   :  { %1056 = vmatprep.subr.bf16.mxu1 %v1097_v0 }
 0xddf   :  { %1058 = vmatpush3.bf16.msra.mxu1 %v1143_v7 }
 0xead   :  { %v617_v41 = vpop.f32.mrb[4].mxu1 }
 0xeae   :  { %v621_v42 = vadd.f32 %v876_v40, %v617_v41  ;;  %v988_v43 = vpop.f32.mrb[5].mxu1 }
 0xeb0   :  { %1085 = vtanh.f32 %v621_v42 }
 0xeba   :  { %v1086_v44 = vpop.eup %1085 }
 0xebb   :  { %v623_v45 = vadd.f32 1.0, %v1086_v44 }
 0xebd   :  { %v624_v47 = vmul.f32 0.5, %v623_v45 }
 0xebf   :  { %v625_v5 = vsel %vm1162_vm4, %v1086_v44, %v624_v47 }
 0xec0   :  { %628 = vrot.lane.b32.xlu1 %v625_v5, %s1100_s18  ;;  %v626_v7 = vmul.f32 %v625_v5, %v535_v35 }
 0xf32   :  { %v629_v4 = vpop.permute.xlu1 %628 }
 0xf33   :  { %v631_v0 = vmul.f32 %v629_v4, %v625_v5 }
 0xf35   :  { %633 = vrot.lane.b32.xlu0 %v631_v0, %s1101_s19 }
 0xfa7   :  { %v634_v48 = vpop.permute.xlu0 %633 }
 0xfa8   :  { %v636_v49 = vadd.f32 %v634_v48, %v626_v7 }
 0xfaa   :  { %1087 = vtanh.f32 %v636_v49 }
 0xfb4   :  { %v1088_v50 = vpop.eup %1087 }
 0xfb5   :  { %639 = vrot.lane.b32.xlu1 %v1088_v50, %s1100_s18 }
0x1027   :  { %v640_v51 = vpop.permute.xlu1 %639 }
0x1028   :  { %v642_v52 = vmul.f32 %v640_v51, %v625_v5 }
0x102a   :  { %650 = vrot.lane.b32.xlu0 %v642_v52, %s1101_s19 }
0x109c   :  { %v651_v53 = vpop.permute.xlu0 %650 }
0x109d   :  { %998 = vmatmul.mubr.msk.f32.vlgmr.msra.gmra.mrb[6].mxu0 %vm15_vm0, %v651_v53 }
0x1170   :  { %v720_v55 = vpop.f32.mrb[6].mxu0 }
0x1171   :  { %v724_v56 = vadd.f32 %v878_v54, %v720_v55  ;;  %v999_v57 = vpop.f32.mrb[7].mxu0 }
0x1173   :  { %1089 = vtanh.f32 %v724_v56 }
0x117d   :  { %v1090_v58 = vpop.eup %1089 }
0x117e   :  { %v726_v59 = vadd.f32 1.0, %v1090_v58 }
0x1180   :  { %v727_v60 = vmul.f32 0.5, %v726_v59 }
0x1182   :  { %v728_v61 = vsel %vm1162_vm4, %v1090_v58, %v727_v60 }
0x1183   :  { %731 = vrot.lane.b32.xlu1 %v728_v61, %s1100_s18  ;;  %v729_v2 = vmul.f32 %v728_v61, %v636_v49 }
0x11f5   :  { %v732_v62 = vpop.permute.xlu1 %731 }
0x11f6   :  { %v734_v1 = vmul.f32 %v732_v62, %v728_v61 }
0x11f8   :  { %736 = vrot.lane.b32.xlu0 %v734_v1, %s1101_s19 }
0x126a   :  { %v737_v3 = vpop.permute.xlu0 %736 }
0x126b   :  { %v739_v6 = vadd.f32 %v737_v3, %v729_v2 }
0x126d   :  { %1091 = vtanh.f32 %v739_v6 }
0x1277   :  { %v1092_v8 = vpop.eup %1091 }
0x1278   :  { %742 = vrot.lane.b32.xlu1 %v1092_v8, %s1100_s18 }
0x12ea   :  { %v743_v9 = vpop.permute.xlu1 %742 }
0x12eb   :  { %v745_v10 = vmul.f32 %v743_v9, %v728_v61 }
0x12ed   :  { %753 = vrot.lane.b32.xlu0 %v745_v10, %s1101_s19 }
0x135f   :  { %v754_v11 = vpop.permute.xlu0 %753 }
0x1360   :  { %1009 = vmatmul.mubr.msk.f32.vlgmr.msra.gmra.mrb[6].mxu1 %vm15_vm0, %v754_v11 }
0x1433   :  { %v823_v13 = vpop.f32.mrb[6].mxu1 }
0x1434   :  { %v827_v14 = vadd.f32 %v880_v12, %v823_v13  ;;  %v1010_v15 = vpop.f32.mrb[7].mxu1 }
0x1436   :  { %1093 = vtanh.f32 %v827_v14 }
0x1440   :  { %v1094_v16 = vpop.eup %1093 }
0x1441   :  { %v829_v18 = vadd.f32 1.0, %v1094_v16 }
0x1443   :  { %v830_v19 = vmul.f32 0.5, %v829_v18 }
0x1445   :  { %v831_v20 = vsel %vm1162_vm4, %v1094_v16, %v830_v19 }
0x1446   :  { %834 = vrot.lane.b32.xlu1 %v831_v20, %s1100_s18  ;;  %v832_v24 = vmul.f32 %v831_v20, %v739_v6 }
0x14b8   :  { %v835_v22 = vpop.permute.xlu1 %834 }
0x14b9   :  { %v837_v23 = vmul.f32 %v835_v22, %v831_v20 }
0x14bb   :  { %839 = vrot.lane.b32.xlu0 %v837_v23, %s1101_s19 }
0x14bf   :  { %232 = vrot.lane.b32.xlu0 %v1189_v46, %s1100_s18 }
0x14c3   :  { %644 = vrot.lane.b32.xlu0 %v642_v52, %s1100_s18 }
0x152d   :  { %v840_v25 = vpop.permute.xlu0 %839 }
0x152e   :  { %v842_v26 = vadd.f32 %v840_v25, %v832_v24 }
0x1530   :  { %1095 = vtanh.f32 %v842_v26 }
0x1531   :  { %v233_v27 = vpop.permute.xlu0 %232 }
0x1532   :  { %236 = vst.msk [vmem:[#allocation4] sm:$0xff] %vm235_vm5, %v233_v27 }
0x1535   :  { %v645_v33 = vpop.permute.xlu0 %644 }
0x153a   :  { %v1096_v17 = vpop.eup %1095 }
0x153b   :  { %845 = vrot.lane.b32.xlu1 %v1096_v17, %s1100_s18 }
0x153f   :  { %336 = vrot.lane.b32.xlu1 %v1208_v63, %s1102_s0 }
0x1543   :  { %747 = vrot.lane.b32.xlu1 %v745_v10, %s1102_s0 }
0x1547   :  { %859 = vrot.lane.b32.xlu1 %v842_v26, %s1102_s0 }
0x15ad   :  { %v846_v28 = vpop.permute.xlu1 %845 }
0x15ae   :  { %v848_v46 = vmul.f32 %v846_v28, %v831_v20 }
0x15b0   :  { %854 = vrot.lane.b32.xlu0 %v848_v46, %s1101_s19 }
0x15b1   :  { %v337_v29 = vpop.permute.xlu1 %336 }
0x15b2   :  { %340 = vst.msk [vmem:[#allocation4] sm:$0xff] %vm339_vm6, %v337_v29 }
0x15b3   :  { %440 = vst.msk [vmem:[#allocation4] sm:$0xff] %vm439_vm7, %v1227_v21 }
0x15b5   :  { %v748_v30 = vpop.permute.xlu1 %747 }
0x15b9   :  { %v860_v31 = vpop.permute.xlu1 %859 }
0x15ba   :  { %v441_v32 = vld [vmem:[#allocation4] sm:$0xff]  ;;  %862 = vst.msk [vmem:[#allocation3] sm:$0xff] %vm15_vm0, %v860_v31 }
0x15bb   :  { %442 = vst [vmem:[%s1303_s2] sm:$0xff] %v441_v32  ;;  %546 = vst.msk [vmem:[#allocation4] sm:$0xff] %vm15_vm0, %v1246_v39 }
0x15bc   :  { %647 = vst.msk [vmem:[#allocation4] sm:$0xff] %vm235_vm5, %v645_v33 }
0x15bd   :  { %750 = vst.msk [vmem:[#allocation4] sm:$0xff] %vm339_vm6, %v748_v30 }
0x15be   :  { %849 = vst.msk [vmem:[#allocation4] sm:$0xff] %vm439_vm7, %v848_v46 }
0x15c5   :  { %v850_v63 = vld [vmem:[#allocation4] sm:$0xff] }
0x15c6   :  { %882 = vst [vmem:[%s1303_s2 + $0x8] sm:$0xff] %v850_v63 }
0x1622   :  { %v855_v21 = vpop.permute.xlu0 %854 }
0x1623   :  { %857 = vst.msk [vmem:[#allocation2] sm:$0xff] %vm15_vm0, %v855_v21 }

</bundles_post_ra>
